<compile_context>
chip_gen: v5e
topology: v5e:2x2
jax: 0.10.0
libtpu: 0.0.40
codegen_flags: <defaults>
</compile_context>

<pallas_src>
import jax
import jax.numpy as jnp
from jax.experimental import pallas as pl
from jax.experimental.pallas import tpu as pltpu

LOG_STD_MAX = 2.0
LOG_STD_MIN = -20.0
HIDDEN = 256
HEAD_PAD = 128      # lane-dense padded width of each head (mean / log_std)


def _round_up(x, m):
    return ((x + m - 1) // m) * m


def _cdiv(a, b):
    return -(-a // b)


def _actor_kernel(obs_ref, w1_ref, b1_ref, w2_ref, b2_ref,
                  whead_ref, bhead_ref, eps_ref, act_ref):
    # layer 1: (tm, K)bf16 @ (K, 256)bf16 -> f32 accumulate; bias + ReLU in f32
    h1 = jnp.dot(obs_ref[...], w1_ref[...],
                 preferred_element_type=jnp.float32) + b1_ref[...]
    h1 = jnp.maximum(h1, 0.0)

    # layer 2: (tm, 256) @ (256, 256)
    h2 = jnp.dot(h1.astype(jnp.bfloat16), w2_ref[...],
                 preferred_element_type=jnp.float32) + b2_ref[...]
    h2 = jnp.maximum(h2, 0.0)

    # fused heads: one MXU pass, columns [0:128) = mu-head, [128:256) = log_std-head
    head = jnp.dot(h2.astype(jnp.bfloat16), whead_ref[...],
                   preferred_element_type=jnp.float32) + bhead_ref[...]
    mean = head[:, :HEAD_PAD]
    log_std = jnp.clip(head[:, HEAD_PAD:], LOG_STD_MIN, LOG_STD_MAX)

    # SquashedDiagGaussian: reparameterized sample + tanh squash (EUP ops ~ free)
    act_ref[...] = jnp.tanh(mean + jnp.exp(log_std) * eps_ref[...])


def pack_params(params, action_dim):
    """Cast / pad / fuse raw (in,out) params into the lane-friendly kernel layout."""
    state_dim = params["w1"].shape[0]
    k_pad = _round_up(max(state_dim, 1), 8)    # sublane-align only; no 128 K-pad

    w1 = jnp.zeros((k_pad, HIDDEN), jnp.bfloat16)
    w1 = w1.at[:state_dim, :].set(params["w1"].astype(jnp.bfloat16))

    whead = jnp.zeros((HIDDEN, 2 * HEAD_PAD), jnp.bfloat16)
    whead = whead.at[:, :action_dim].set(params["wmu"].astype(jnp.bfloat16))
    whead = whead.at[:, HEAD_PAD:HEAD_PAD + action_dim].set(
        params["wls"].astype(jnp.bfloat16))

    bhead = jnp.zeros((1, 2 * HEAD_PAD), jnp.float32)
    bhead = bhead.at[:, :action_dim].set(params["bmu"].reshape(1, -1).astype(jnp.float32))
    bhead = bhead.at[:, HEAD_PAD:HEAD_PAD + action_dim].set(
        params["bls"].reshape(1, -1).astype(jnp.float32))

    return {"w1": w1,
            "b1": params["b1"].reshape(1, HIDDEN).astype(jnp.float32),
            "w2": params["w2"].astype(jnp.bfloat16),
            "b2": params["b2"].reshape(1, HIDDEN).astype(jnp.float32),
            "whead": whead, "bhead": bhead}


def _batch_tiling(batch, *, tm_cap=1024, num_cores=2):
    """Remainder-aware batch tile: big tiles (amortize ~600cyc/step), <=8 rows of
    padding waste, and an even number of grid steps for v7x's two TensorCores
    once there is enough work to be worth splitting."""
    b8 = _round_up(max(batch, 1), 8)
    n_steps = _cdiv(b8, tm_cap)
    if b8 >= 512:
        n_steps = _round_up(n_steps, num_cores)
    tm = _round_up(_cdiv(b8, n_steps), 8)
    b_pad = tm * n_steps
    return tm, b_pad, n_steps


def actor_forward(obs, params, eps, *, tm_cap=1024):
    """obs: (B, state_dim) or (B, S, D); eps: (B, action_dim) N(0,1) noise."""
    if obs.ndim == 3:                                   # nn.Flatten(1, -1)
        obs = obs.reshape(obs.shape[0], -1)

    B, state_dim = obs.shape
    action_dim = params["wmu"].shape[1]
    assert action_dim <= HEAD_PAD, "action_dim > 128 not supported by fused head layout"

    packed = pack_params(params, action_dim)
    k_pad = packed["w1"].shape[0]

    tm, b_pad, n_steps = _batch_tiling(B, tm_cap=tm_cap)

    obs_p = jnp.zeros((b_pad, k_pad), jnp.bfloat16).at[:B, :state_dim].set(
        obs.astype(jnp.bfloat16))
    eps_p = jnp.zeros((b_pad, HEAD_PAD), jnp.float32).at[:B, :action_dim].set(
        eps.astype(jnp.float32))

    def row_spec(cols):
        return pl.BlockSpec((tm, cols), lambda i: (i, 0))

    def const_spec(shape):
        return pl.BlockSpec(shape, lambda i: (0, 0))

    cp_kwargs = dict(dimension_semantics=("parallel",))   # dual-TC on v7x
    if tm > 2048:
        # only needed if a caller pushes very large tiles (v5e scoped default 16 MiB)
        cp_kwargs["vmem_limit_bytes"] = 64 * 1024 * 1024

    out = pl.pallas_call(
        _actor_kernel,
        out_shape=jax.ShapeDtypeStruct((b_pad, HEAD_PAD), jnp.float32),
        grid=(n_steps,),
        in_specs=[
            row_spec(k_pad),                      # obs tile (streamed, native K width)
            const_spec((k_pad, HIDDEN)),          # w1 (VMEM-resident, bf16)
            const_spec((1, HIDDEN)),              # b1 (f32)
            const_spec((HIDDEN, HIDDEN)),         # w2 (bf16)
            const_spec((1, HIDDEN)),              # b2 (f32)
            const_spec((HIDDEN, 2 * HEAD_PAD)),   # fused head weights (bf16)
            const_spec((1, 2 * HEAD_PAD)),        # fused head bias (f32)
            row_spec(HEAD_PAD),                   # eps tile (streamed)
        ],
        out_specs=row_spec(HEAD_PAD),             # lane-dense (tm, 128) store
        compiler_params=pltpu.CompilerParams(**cp_kwargs),
    )(obs_p, packed["w1"], packed["b1"], packed["w2"], packed["b2"],
      packed["whead"], packed["bhead"], eps_p)

    return out[:B, :action_dim]


def init_params(key, state_dim, action_dim):
    """torch.nn.Linear-style U(-1/sqrt(fan_in), 1/sqrt(fan_in)); weights stored (in, out)."""
    def linear(k, fan_in, fan_out):
        kw, kb = jax.random.split(k)
        bound = 1.0 / jnp.sqrt(fan_in)
        w = jax.random.uniform(kw, (fan_in, fan_out), jnp.float32, -bound, bound)
        b = jax.random.uniform(kb, (1, fan_out), jnp.float32, -bound, bound)
        return w, b

    k1, k2, k3, k4 = jax.random.split(key, 4)
    w1, b1 = linear(k1, state_dim, HIDDEN)
    w2, b2 = linear(k2, HIDDEN, HIDDEN)
    wmu, bmu = linear(k3, HIDDEN, action_dim)
    wls, bls = linear(k4, HIDDEN, action_dim)
    return {"w1": w1, "b1": b1, "w2": w2, "b2": b2,
            "wmu": wmu, "bmu": bmu, "wls": wls, "bls": bls}


def actor_forward_ref(obs, params, eps):
    """Pure f32 reference of the PyTorch forward (module semantics)."""
    if obs.ndim == 3:
        obs = obs.reshape(obs.shape[0], -1)
    h1 = jnp.maximum(obs @ params["w1"] + params["b1"], 0.0)
    h2 = jnp.maximum(h1 @ params["w2"] + params["b2"], 0.0)
    mean = h2 @ params["wmu"] + params["bmu"]
    log_std = jnp.clip(h2 @ params["wls"] + params["bls"], LOG_STD_MIN, LOG_STD_MAX)
    return jnp.tanh(mean + jnp.exp(log_std) * eps)


def actor_forward_ref_bf16(obs, params, eps):
    """Reference reproducing the kernel's bf16-matmul / f32-accumulate numerics."""
    if obs.ndim == 3:
        obs = obs.reshape(obs.shape[0], -1)
    state_dim = obs.shape[1]
    action_dim = params["wmu"].shape[1]
    packed = pack_params(params, action_dim)
    x = obs.astype(jnp.bfloat16)
    h1 = jnp.maximum(jnp.dot(x, packed["w1"][:state_dim],
                             preferred_element_type=jnp.float32) + packed["b1"], 0.0)
    h2 = jnp.maximum(jnp.dot(h1.astype(jnp.bfloat16), packed["w2"],
                             preferred_element_type=jnp.float32) + packed["b2"], 0.0)
    head = jnp.dot(h2.astype(jnp.bfloat16), packed["whead"],
                   preferred_element_type=jnp.float32) + packed["bhead"]
    mean = head[:, :action_dim]
    log_std = jnp.clip(head[:, HEAD_PAD:HEAD_PAD + action_dim], LOG_STD_MIN, LOG_STD_MAX)
    return jnp.tanh(mean + jnp.exp(log_std) * eps)


if __name__ == "__main__":
    key = jax.random.PRNGKey(0)
    k_param, k_obs, k_eps, k_obs2, k_eps2 = jax.random.split(key, 5)

    # small inference-style case (single grid step)
    batch, state_dim, action_dim = 8, 16, 4
    params = init_params(k_param, state_dim, action_dim)
    obs = jax.random.normal(k_obs, (batch, state_dim), jnp.float32)
    eps = jax.random.normal(k_eps, (batch, action_dim), jnp.float32)

    actions = actor_forward(obs, params, eps)
    jax.block_until_ready(actions)
    assert actions.shape == (batch, action_dim)
    ref16 = actor_forward_ref_bf16(obs, params, eps)
    assert jnp.allclose(actions, ref16, atol=2e-3, rtol=0.0), \
        float(jnp.max(jnp.abs(actions - ref16)))
    ref32 = actor_forward_ref(obs, params, eps)
    assert float(jnp.max(jnp.abs(actions - ref32))) < 0.1   # bf16-matmul tolerance

    # larger non-tile-multiple batch: exercises the remainder-aware, even-split
    # pipelined grid (B=520 -> grid=2, tm=264, b_pad=528, ~1.5% padding)
    big_batch = 520
    obs_b = jax.random.normal(k_obs2, (big_batch, state_dim), jnp.float32)
    eps_b = jax.random.normal(k_eps2, (big_batch, action_dim), jnp.float32)
    actions_b = actor_forward(obs_b, params, eps_b)
    jax.block_until_ready(actions_b)
    assert actions_b.shape == (big_batch, action_dim)
    ref16_b = actor_forward_ref_bf16(obs_b, params, eps_b)
    assert jnp.allclose(actions_b, ref16_b, atol=2e-3, rtol=0.0), \
        float(jnp.max(jnp.abs(actions_b - ref16_b)))
    ref32_b = actor_forward_ref(obs_b, params, eps_b)
    assert float(jnp.max(jnp.abs(actions_b - ref32_b))) < 0.1

    print("KERNEL_OK")
</pallas_src>

<mosaic_0001>
module attributes {stable_mosaic.version = 11 : i64} {
  func.func @_actor_kernel(%arg0: i32, %arg1: memref<8x16xbf16, #tpu.memory_space<vmem>>, %arg2: memref<16x256xbf16, #tpu.memory_space<vmem>>, %arg3: memref<1x256xf32, #tpu.memory_space<vmem>>, %arg4: memref<256x256xbf16, #tpu.memory_space<vmem>>, %arg5: memref<1x256xf32, #tpu.memory_space<vmem>>, %arg6: memref<256x256xbf16, #tpu.memory_space<vmem>>, %arg7: memref<1x256xf32, #tpu.memory_space<vmem>>, %arg8: memref<8x128xf32, #tpu.memory_space<vmem>>, %arg9: memref<8x128xf32, #tpu.memory_space<vmem>>) attributes {dimension_semantics = [#tpu.dimension_semantics<parallel>], iteration_bounds = array<i64: 1>, scalar_prefetch = 0 : i64, scratch_operands = 0 : i64, tpu.core_type = #tpu.core_type<tc>, window_params = [{transform_indices = @transform_0, window_bounds = array<i64: 8, 16>}, {pipeline_mode = #tpu.pipeline_mode<synchronous>, transform_indices = @transform_1, window_bounds = array<i64: 16, 256>}, {pipeline_mode = #tpu.pipeline_mode<synchronous>, transform_indices = @transform_2, window_bounds = array<i64: 1, 256>}, {pipeline_mode = #tpu.pipeline_mode<synchronous>, transform_indices = @transform_3, window_bounds = array<i64: 256, 256>}, {pipeline_mode = #tpu.pipeline_mode<synchronous>, transform_indices = @transform_4, window_bounds = array<i64: 1, 256>}, {pipeline_mode = #tpu.pipeline_mode<synchronous>, transform_indices = @transform_5, window_bounds = array<i64: 256, 256>}, {pipeline_mode = #tpu.pipeline_mode<synchronous>, transform_indices = @transform_6, window_bounds = array<i64: 1, 256>}, {transform_indices = @transform_7, window_bounds = array<i64: 8, 128>}, {transform_indices = @transform_8, window_bounds = array<i64: 8, 128>}]} {
    %c0 = arith.constant 0 : index
    %c0_0 = arith.constant 0 : index
    %0 = vector.load %arg1[%c0, %c0_0] : memref<8x16xbf16, #tpu.memory_space<vmem>>, vector<8x16xbf16>
    %c0_1 = arith.constant 0 : index
    %c0_2 = arith.constant 0 : index
    %1 = vector.load %arg2[%c0_1, %c0_2] : memref<16x256xbf16, #tpu.memory_space<vmem>>, vector<16x256xbf16>
    %cst = arith.constant dense<0.000000e+00> : vector<8x256xf32>
    %2 = tpu.matmul %0, %1, %cst {dimension_numbers = #tpu.dot_dimension_numbers<[1], [0], [0], [1], [0, 0, 1, 1], [], []>} : vector<8x16xbf16>, vector<16x256xbf16>, vector<8x256xf32> -> vector<8x256xf32>
    %c0_3 = arith.constant 0 : index
    %c0_4 = arith.constant 0 : index
    %3 = vector.load %arg3[%c0_3, %c0_4] : memref<1x256xf32, #tpu.memory_space<vmem>>, vector<1x256xf32>
    %4 = vector.broadcast %3 : vector<1x256xf32> to vector<8x256xf32>
    %5 = arith.addf %2, %4 : vector<8x256xf32>
    %cst_5 = arith.constant 0.000000e+00 : f32
    %6 = vector.broadcast %cst_5 : f32 to vector<8x256xf32>
    %7 = arith.maximumf %5, %6 : vector<8x256xf32>
    %8 = arith.truncf %7 : vector<8x256xf32> to vector<8x256xbf16>
    %c0_6 = arith.constant 0 : index
    %c0_7 = arith.constant 0 : index
    %9 = vector.load %arg4[%c0_6, %c0_7] : memref<256x256xbf16, #tpu.memory_space<vmem>>, vector<256x256xbf16>
    %cst_8 = arith.constant dense<0.000000e+00> : vector<8x256xf32>
    %10 = tpu.matmul %8, %9, %cst_8 {dimension_numbers = #tpu.dot_dimension_numbers<[1], [0], [0], [1], [0, 0, 1, 1], [], []>} : vector<8x256xbf16>, vector<256x256xbf16>, vector<8x256xf32> -> vector<8x256xf32>
    %c0_9 = arith.constant 0 : index
    %c0_10 = arith.constant 0 : index
    %11 = vector.load %arg5[%c0_9, %c0_10] : memref<1x256xf32, #tpu.memory_space<vmem>>, vector<1x256xf32>
    %12 = vector.broadcast %11 : vector<1x256xf32> to vector<8x256xf32>
    %13 = arith.addf %10, %12 : vector<8x256xf32>
    %cst_11 = arith.constant 0.000000e+00 : f32
    %14 = vector.broadcast %cst_11 : f32 to vector<8x256xf32>
    %15 = arith.maximumf %13, %14 : vector<8x256xf32>
    %16 = arith.truncf %15 : vector<8x256xf32> to vector<8x256xbf16>
    %c0_12 = arith.constant 0 : index
    %c0_13 = arith.constant 0 : index
    %17 = vector.load %arg6[%c0_12, %c0_13] : memref<256x256xbf16, #tpu.memory_space<vmem>>, vector<256x256xbf16>
    %cst_14 = arith.constant dense<0.000000e+00> : vector<8x256xf32>
    %18 = tpu.matmul %16, %17, %cst_14 {dimension_numbers = #tpu.dot_dimension_numbers<[1], [0], [0], [1], [0, 0, 1, 1], [], []>} : vector<8x256xbf16>, vector<256x256xbf16>, vector<8x256xf32> -> vector<8x256xf32>
    %c0_15 = arith.constant 0 : index
    %c0_16 = arith.constant 0 : index
    %19 = vector.load %arg7[%c0_15, %c0_16] : memref<1x256xf32, #tpu.memory_space<vmem>>, vector<1x256xf32>
    %20 = vector.broadcast %19 : vector<1x256xf32> to vector<8x256xf32>
    %21 = arith.addf %18, %20 : vector<8x256xf32>
    %22 = vector.extract_strided_slice %21 {offsets = [0, 0], sizes = [8, 128], strides = [1, 1]} : vector<8x256xf32> to vector<8x128xf32>
    %23 = vector.extract_strided_slice %21 {offsets = [0, 128], sizes = [8, 128], strides = [1, 1]} : vector<8x256xf32> to vector<8x128xf32>
    %cst_17 = arith.constant -2.000000e+01 : f32
    %cst_18 = arith.constant 2.000000e+00 : f32
    %24 = vector.broadcast %cst_17 : f32 to vector<8x128xf32>
    %25 = arith.maximumf %24, %23 : vector<8x128xf32>
    %26 = vector.broadcast %cst_18 : f32 to vector<8x128xf32>
    %27 = arith.minimumf %26, %25 : vector<8x128xf32>
    %28 = math.exp %27 : vector<8x128xf32>
    %c0_19 = arith.constant 0 : index
    %c0_20 = arith.constant 0 : index
    %29 = vector.load %arg8[%c0_19, %c0_20] : memref<8x128xf32, #tpu.memory_space<vmem>>, vector<8x128xf32>
    %30 = arith.mulf %28, %29 : vector<8x128xf32>
    %31 = arith.addf %22, %30 : vector<8x128xf32>
    %32 = math.tanh %31 : vector<8x128xf32>
    %c0_21 = arith.constant 0 : index
    %c0_22 = arith.constant 0 : index
    %33 = vector.load %arg9[%c0_21, %c0_22] : memref<8x128xf32, #tpu.memory_space<vmem>>, vector<8x128xf32>
    tpu.vector_store %arg9[%c0_21, %c0_22], %32 {strides = array<i32>} : memref<8x128xf32, #tpu.memory_space<vmem>>, vector<8x128xf32>,
    return
  }
  func.func @transform_0(%arg0: i32) -> (i32, i32) {
    %c0_i32 = arith.constant 0 : i32
    %c0_i32_0 = arith.constant 0 : i32
    return %arg0, %c0_i32 : i32, i32
  }
  func.func @transform_1(%arg0: i32) -> (i32, i32) {
    %c0_i32 = arith.constant 0 : i32
    %c0_i32_0 = arith.constant 0 : i32
    %c0_i32_1 = arith.constant 0 : i32
    return %c0_i32, %c0_i32_0 : i32, i32
  }
  func.func @transform_2(%arg0: i32) -> (i32, i32) {
    %c0_i32 = arith.constant 0 : i32
    %c0_i32_0 = arith.constant 0 : i32
    %c0_i32_1 = arith.constant 0 : i32
    return %c0_i32, %c0_i32_0 : i32, i32
  }
  func.func @transform_3(%arg0: i32) -> (i32, i32) {
    %c0_i32 = arith.constant 0 : i32
    %c0_i32_0 = arith.constant 0 : i32
    %c0_i32_1 = arith.constant 0 : i32
    return %c0_i32, %c0_i32_0 : i32, i32
  }
  func.func @transform_4(%arg0: i32) -> (i32, i32) {
    %c0_i32 = arith.constant 0 : i32
    %c0_i32_0 = arith.constant 0 : i32
    %c0_i32_1 = arith.constant 0 : i32
    return %c0_i32, %c0_i32_0 : i32, i32
  }
  func.func @transform_5(%arg0: i32) -> (i32, i32) {
    %c0_i32 = arith.constant 0 : i32
    %c0_i32_0 = arith.constant 0 : i32
    %c0_i32_1 = arith.constant 0 : i32
    return %c0_i32, %c0_i32_0 : i32, i32
  }
  func.func @transform_6(%arg0: i32) -> (i32, i32) {
    %c0_i32 = arith.constant 0 : i32
    %c0_i32_0 = arith.constant 0 : i32
    %c0_i32_1 = arith.constant 0 : i32
    return %c0_i32, %c0_i32_0 : i32, i32
  }
  func.func @transform_7(%arg0: i32) -> (i32, i32) {
    %c0_i32 = arith.constant 0 : i32
    %c0_i32_0 = arith.constant 0 : i32
    return %arg0, %c0_i32 : i32, i32
  }
  func.func @transform_8(%arg0: i32) -> (i32, i32) {
    %c0_i32 = arith.constant 0 : i32
    %c0_i32_0 = arith.constant 0 : i32
    return %arg0, %c0_i32 : i32, i32
  }
}

</mosaic_0001>

<bundles_post_ra>
// kernel: tpu_custom_call.1
= control target key start
LH: loop header
LB: loop body
LE: loop exit
PB: predicated region body
PF: predicated region fallthrough
CT: control target
= control target key end

     0   :  { %13 = vsyncpa [#allocation3], 0  ;;  %s1320_s0 = inlined_call_operand.hbm [shape: bf16[8,16], index: 0, kind: input, shape index: {}]   ;;  %s1321_s1 = inlined_call_operand.hbm [shape: bf16[16,256], index: 1, kind: input, shape index: {}]   ;;  %s1322_s2 = inlined_call_operand.hbm [shape: f32[1,256], index: 2, kind: input, shape index: {}]   ;;  %s1323_s3 = inlined_call_operand.hbm [shape: bf16[256,256], index: 3, kind: input, shape index: {}]   ;;  %s1324_s4 = inlined_call_operand.vmem [shape: f32[1,256], index: 4, kind: input, shape index: {}]   ;;  %s1325_s5 = inlined_call_operand.hbm [shape: bf16[256,256], index: 5, kind: input, shape index: {}]   ;;  %s1326_s6 = inlined_call_operand.vmem [shape: f32[1,256], index: 6, kind: input, shape index: {}]   ;;  %s1327_s7 = inlined_call_operand.hbm [shape: f32[8,128], index: 7, kind: input, shape index: {}]   ;;  %s1328_s8 = inlined_call_operand.hbm [shape: f32[8,128], index: 8, kind: output, shape index: {}]  }
   0x1   :  { %14 = vsyncpa [#allocation6], 0 }
   0x2   :  { %15 = vsyncpa [#allocation9], 0 }
   0x3   :  { %16 = vsyncpa [#allocation12], 0  ;;  %s33_s29 = sshll.u32 %s1321_s1, 4  ;;  %s34_s29 = int_to_ptr.hbm [resolvable:$true] %s33_s29 }
   0x4   :  { %17 = vsyncpa [#allocation4], 0  ;;  %s1228_s30 = smov [#allocation5]   ;;  %s57_s12 = sshll.u32 %s1323_s3, 4  ;;  %s58_s12 = int_to_ptr.hbm [resolvable:$true] %s57_s12 }
   0x5   :  { %s35_s9 = sshll.u32 %s1228_s30, 4  ;;  %s1229_s13 = smov 128   ;;  %s36_s9 = int_to_ptr.vmem [resolvable:$true] %s35_s9 }
   0x6   :  { %s1230_s14 = smov 8   ;;  %s1231_s15 = smov [#allocation8]  }
   0x7   :  { %41 = dma.hbm_to_vmem [thread:$0]  %s34_s29, 256, %s36_s9, [#allocation6], %s1229_s13, %s1229_s13, %s1230_s14  }
   0x8   :  { %s59_s16 = sshll.u32 %s1231_s15, 4  ;;  %s23_s18 = sshll.u32 %s1320_s0, 4  ;;  %s60_s16 = int_to_ptr.vmem [resolvable:$true] %s59_s16  ;;  %s24_s18 = int_to_ptr.hbm [resolvable:$true] %s23_s18 }
   0x9   :  { %65 = dma.hbm_to_vmem [thread:$0]  %s58_s12, 4096, %s60_s16, [#allocation9], %s1229_s13, %s1229_s13, %s1230_s14  }
   0xa   :  { %s47_s20 = sshll.u32 %s1322_s2, 4  ;;  %s1232_s21 = smov [#allocation2]   ;;  %s48_s20 = int_to_ptr.hbm [resolvable:$true] %s47_s20 }
   0xb   :  { %s25_s22 = sshll.u32 %s1232_s21, 4  ;;  %s1233_s23 = smov [#allocation7]   ;;  %s26_s22 = int_to_ptr.vmem [resolvable:$true] %s25_s22 }
   0xc   :  { %28 = dma.hbm_to_vmem [thread:$0]  %s24_s18, 64, %s26_s22, [#allocation3]  }
   0xd   :  { %s49_s24 = sshll.u32 %s1233_s23, 4  ;;  %s72_s0 = sshll.u32 %s1325_s5, 4  ;;  %s50_s24 = int_to_ptr.vmem [resolvable:$true] %s49_s24  ;;  %s73_s0 = int_to_ptr.hbm [resolvable:$true] %s72_s0 }
   0xe   :  { %52 = dma.hbm_to_vmem [thread:$0]  %s48_s20, 32, %s50_s24, [#allocation6]  }
   0xf   :  { %s88_s29 = sshll.u32 %s1327_s7, 4  ;;  %s1234_s30 = smov [#allocation10]   ;;  %s89_s29 = int_to_ptr.hbm [resolvable:$true] %s88_s29 }
  0x10   :  { %s74_s2 = sshll.u32 %s1234_s30, 4  ;;  %s1235_s9 = smov [#allocation11]   ;;  %s75_s2 = int_to_ptr.vmem [resolvable:$true] %s74_s2 }
  0x11   :  { %80 = dma.hbm_to_vmem [thread:$0]  %s73_s0, 4096, %s75_s2, [#allocation9], %s1229_s13, %s1229_s13, %s1230_s14  }
  0x12   :  { %s90_s10 = sshll.u32 %s1235_s9, 4  ;;  %s91_s10 = int_to_ptr.vmem [resolvable:$true] %s90_s10 }
  0x13   :  { %93 = dma.hbm_to_vmem [thread:$0]  %s89_s29, 128, %s91_s10, [#allocation12]  }
  0x14   :  { %1218 = dma.done.wait [#allocation3], 64  }
  0x15   :  { %1219 = vsyncadd [#allocation3], 4294967232 }
  0x16   :  { %1220 = dma.done.wait [#allocation6], 288  }
  0x17   :  { %1221 = vsyncadd [#allocation6], 4294967008 }
  0x18   :  { %1222 = dma.done.wait [#allocation9], 8192  }
  0x19   :  { %1223 = vsyncadd [#allocation9], 4294959104 }
  0x1a   :  { %1224 = dma.done.wait [#allocation12], 128  }
  0x1b   :  { %1225 = vsyncadd [#allocation12], 4294967168  ;;  %vm138_vm0 = vcmask 130048   ;;  %v707_v0 = vld [vmem:[#allocation5] sm:$0xf]  ;;  %s692_s15 = sshll.u32 %s1328_s8, 4  ;;  %s693_s15 = int_to_ptr.hbm [resolvable:$true] %s692_s15 }
  0x1c   :  { %v972_v1 = vld [vmem:[#allocation5 + $0x4] sm:$0xf0]  ;;  %v971_v2 = vld [vmem:[#allocation5 + $0x4] sm:$0xf]  ;;  %v709_v4 = vld [vmem:[#allocation5 + $0x8] sm:$0xf0] }
  0x1d   :  { %v708_v3 = vor.u32 %v972_v1, %v707_v0  ;;  %v119_v5 = vld [vmem:[#allocation2] sm:$0xf]  ;;  %v773_v6 = vld [vmem:[#allocation8 + $0x70] sm:$0xf]  ;;  %v712_v7 = vor.u32 %v971_v2, %v709_v4  ;;  %v988_v8 = vld [vmem:[#allocation8 + $0x74] sm:$0xf0] }
  0x1e   :  { %v837_v9 = vld [vmem:[#allocation8 + $0xf0] sm:$0xf]  ;;  %v1004_v10 = vld [vmem:[#allocation8 + $0xf4] sm:$0xf0]  ;;  %v774_v11 = vor.u32 %v988_v8, %v773_v6  ;;  %v987_v13 = vld [vmem:[#allocation8 + $0x74] sm:$0xf] }
  0x1f   :  { %149 = vmatpush.bf16.msra.mxu0 %v708_v3  ;;  %v838_v12 = vor.u32 %v1004_v10, %v837_v9  ;;  %v775_v14 = vld [vmem:[#allocation8 + $0x78] sm:$0xf0]  ;;  %v1003_v15 = vld [vmem:[#allocation8 + $0xf4] sm:$0xf]  ;;  %162 = vmatpush.bf16.msra.mxu1 %v712_v7  ;;  %v765_v18 = vld [vmem:[#allocation8 + $0x60] sm:$0xf] }
  0x20   :  { %v778_v16 = vor.u32 %v987_v13, %v775_v14  ;;  %v839_v17 = vld [vmem:[#allocation8 + $0xf8] sm:$0xf0]  ;;  %v986_v19 = vld [vmem:[#allocation8 + $0x64] sm:$0xf0]  ;;  %370 = vmatpush.bf16.msra.mxu2 %v774_v11  ;;  %v829_v22 = vld [vmem:[#allocation8 + $0xe0] sm:$0xf] }
  0x21   :  { %383 = vmatpush.bf16.msra.mxu3 %v838_v12  ;;  %v842_v20 = vor.u32 %v1003_v15, %v839_v17  ;;  %v766_v21 = vor.u32 %v986_v19, %v765_v18  ;;  %v1002_v23 = vld [vmem:[#allocation8 + $0xe4] sm:$0xf0]  ;;  %v985_v24 = vld [vmem:[#allocation8 + $0x64] sm:$0xf]  ;;  %v767_v26 = vld [vmem:[#allocation8 + $0x68] sm:$0xf0] }
  0x22   :  { %713 = vmatmul.msk.bf16.vlgmr.msra.gmra.mxu0 %vm138_vm0, %v119_v5  ;;  %v830_v25 = vor.u32 %v1002_v23, %v829_v22  ;;  %v1001_v27 = vld [vmem:[#allocation8 + $0xe4] sm:$0xf]  ;;  %v831_v28 = vld [vmem:[#allocation8 + $0xe8] sm:$0xf0]  ;;  %714 = vmatmul.msk.bf16.vlgmr.msra.gmra.mxu1 %vm138_vm0, %v119_v5  ;;  %v770_v29 = vor.u32 %v985_v24, %v767_v26  ;;  %v757_v30 = vld [vmem:[#allocation8 + $0x50] sm:$0xf] }
  0x23   :  { %396 = vmatpush.bf16.msrb.mxu0 %v778_v16  ;;  %v984_v31 = vld [vmem:[#allocation8 + $0x54] sm:$0xf0]  ;;  %v821_v32 = vld [vmem:[#allocation8 + $0xd0] sm:$0xf]  ;;  %409 = vmatpush.bf16.msrb.mxu1 %v842_v20  ;;  %v834_v33 = vor.u32 %v1001_v27, %v831_v28  ;;  %v983_v35 = vld [vmem:[#allocation8 + $0x54] sm:$0xf] }
  0x24   :  { %v1000_v34 = vld [vmem:[#allocation8 + $0xd4] sm:$0xf0]  ;;  %v759_v36 = vld [vmem:[#allocation8 + $0x58] sm:$0xf0]  ;;  %371 = vmatpush.bf16.msra.mxu2 %v766_v21  ;;  %v758_v37 = vor.u32 %v984_v31, %v757_v30  ;;  %v999_v39 = vld [vmem:[#allocation8 + $0xd4] sm:$0xf] }
  0x25   :  { %384 = vmatpush.bf16.msra.mxu3 %v830_v25  ;;  %v822_v38 = vor.u32 %v1000_v34, %v821_v32  ;;  %v823_v40 = vld [vmem:[#allocation8 + $0xd8] sm:$0xf0]  ;;  %v749_v41 = vld [vmem:[#allocation8 + $0x40] sm:$0xf]  ;;  %v982_v42 = vld [vmem:[#allocation8 + $0x44] sm:$0xf0]  ;;  %v762_v45 = vor.u32 %v983_v35, %v759_v36 }
  0x26   :  { %v813_v43 = vld [vmem:[#allocation8 + $0xc0] sm:$0xf]  ;;  %v998_v44 = vld [vmem:[#allocation8 + $0xc4] sm:$0xf0]  ;;  %v826_v46 = vor.u32 %v999_v39, %v823_v40  ;;  %v981_v47 = vld [vmem:[#allocation8 + $0x44] sm:$0xf]  ;;  %v750_v49 = vor.u32 %v982_v42, %v749_v41 }
  0x27   :  { %397 = vmatpush.bf16.msrb.mxu0 %v770_v29  ;;  %410 = vmatpush.bf16.msrb.mxu1 %v834_v33  ;;  %v751_v48 = vld [vmem:[#allocation8 + $0x48] sm:$0xf0]  ;;  %v814_v50 = vor.u32 %v998_v44, %v813_v43  ;;  %v997_v51 = vld [vmem:[#allocation8 + $0xc4] sm:$0xf]  ;;  %v741_v53 = vld [vmem:[#allocation8 + $0x30] sm:$0xf] }
  0x28   :  { %372 = vmatpush.bf16.msra.mxu2 %v758_v37  ;;  %v815_v52 = vld [vmem:[#allocation8 + $0xc8] sm:$0xf0]  ;;  %v980_v54 = vld [vmem:[#allocation8 + $0x34] sm:$0xf0]  ;;  %v805_v55 = vld [vmem:[#allocation8 + $0xb0] sm:$0xf]  ;;  %v754_v57 = vor.u32 %v981_v47, %v751_v48 }
  0x29   :  { %385 = vmatpush.bf16.msra.mxu3 %v822_v38  ;;  %v996_v56 = vld [vmem:[#allocation8 + $0xb4] sm:$0xf0]  ;;  %v818_v58 = vor.u32 %v997_v51, %v815_v52  ;;  %v979_v59 = vld [vmem:[#allocation8 + $0x34] sm:$0xf]  ;;  %v743_v60 = vld [vmem:[#allocation8 + $0x38] sm:$0xf0]  ;;  %v742_v61 = vor.u32 %v980_v54, %v741_v53 }
  0x2a   :  { %v806_v62 = vor.u32 %v996_v56, %v805_v55  ;;  %v995_v63 = vld [vmem:[#allocation8 + $0xb4] sm:$0xf]  ;;  %v807_v0 = vld [vmem:[#allocation8 + $0xb8] sm:$0xf0]  ;;  %v733_v1 = vld [vmem:[#allocation8 + $0x20] sm:$0xf]  ;;  %v746_v5 = vor.u32 %v979_v59, %v743_v60 }
  0x2b   :  { %398 = vmatpush.bf16.msrb.mxu0 %v762_v45  ;;  %411 = vmatpush.bf16.msrb.mxu1 %v826_v46  ;;  %v978_v2 = vld [vmem:[#allocation8 + $0x24] sm:$0xf0]  ;;  %v797_v3 = vld [vmem:[#allocation8 + $0xa0] sm:$0xf]  ;;  %v810_v6 = vor.u32 %v995_v63, %v807_v0  ;;  %v977_v7 = vld [vmem:[#allocation8 + $0x24] sm:$0xf] }
  0x2c   :  { %373 = vmatpush.bf16.msra.mxu2 %v750_v49  ;;  %v994_v4 = vld [vmem:[#allocation8 + $0xa4] sm:$0xf0]  ;;  %v735_v8 = vld [vmem:[#allocation8 + $0x28] sm:$0xf0]  ;;  %v734_v9 = vor.u32 %v978_v2, %v733_v1  ;;  %v993_v11 = vld [vmem:[#allocation8 + $0xa4] sm:$0xf] }
  0x2d   :  { %386 = vmatpush.bf16.msra.mxu3 %v814_v50  ;;  %v798_v10 = vor.u32 %v994_v4, %v797_v3  ;;  %v799_v12 = vld [vmem:[#allocation8 + $0xa8] sm:$0xf0]  ;;  %v738_v13 = vor.u32 %v977_v7, %v735_v8  ;;  %v725_v15 = vld [vmem:[#allocation8 + $0x10] sm:$0xf]  ;;  %v976_v16 = vld [vmem:[#allocation8 + $0x14] sm:$0xf0] }
  0x2e   :  { %v802_v14 = vor.u32 %v993_v11, %v799_v12  ;;  %v789_v17 = vld [vmem:[#allocation8 + $0x90] sm:$0xf]  ;;  %v726_v18 = vor.u32 %v976_v16, %v725_v15  ;;  %v992_v19 = vld [vmem:[#allocation8 + $0x94] sm:$0xf0]  ;;  %v975_v20 = vld [vmem:[#allocation8 + $0x14] sm:$0xf] }
  0x2f   :  { %399 = vmatpush.bf16.msrb.mxu0 %v754_v57  ;;  %412 = vmatpush.bf16.msrb.mxu1 %v818_v58  ;;  %v727_v21 = vld [vmem:[#allocation8 + $0x18] sm:$0xf0]  ;;  %v790_v22 = vor.u32 %v992_v19, %v789_v17  ;;  %v991_v24 = vld [vmem:[#allocation8 + $0x94] sm:$0xf]  ;;  %v717_v27 = vld [vmem:[#allocation8] sm:$0xf] }
  0x30   :  { %374 = vmatpush.bf16.msra.mxu2 %v742_v61  ;;  %v730_v23 = vor.u32 %v975_v20, %v727_v21  ;;  %v791_v25 = vld [vmem:[#allocation8 + $0x98] sm:$0xf0]  ;;  %v974_v28 = vld [vmem:[#allocation8 + $0x4] sm:$0xf0]  ;;  %v781_v29 = vld [vmem:[#allocation8 + $0x80] sm:$0xf] }
  0x31   :  { %387 = vmatpush.bf16.msra.mxu3 %v806_v62  ;;  %v794_v26 = vor.u32 %v991_v24, %v791_v25  ;;  %v718_v30 = vor.u32 %v974_v28, %v717_v27  ;;  %v990_v31 = vld [vmem:[#allocation8 + $0x84] sm:$0xf0]  ;;  %v973_v32 = vld [vmem:[#allocation8 + $0x4] sm:$0xf]  ;;  %v719_v33 = vld [vmem:[#allocation8 + $0x8] sm:$0xf0] }
  0x32   :  { %v782_v34 = vor.u32 %v990_v31, %v781_v29  ;;  %v722_v35 = vor.u32 %v973_v32, %v719_v33  ;;  %v989_v36 = vld [vmem:[#allocation8 + $0x84] sm:$0xf]  ;;  %v783_v37 = vld [vmem:[#allocation8 + $0x88] sm:$0xf0]  ;;  %v965_v39 = vld [vmem:[#allocation10 + $0xf0] sm:$0xf] }
  0x33   :  { %400 = vmatpush.bf16.msrb.mxu0 %v746_v5  ;;  %413 = vmatpush.bf16.msrb.mxu1 %v810_v6  ;;  %v786_v38 = vor.u32 %v989_v36, %v783_v37  ;;  %v1036_v40 = vld [vmem:[#allocation10 + $0xf4] sm:$0xf0]  ;;  %v1035_v41 = vld [vmem:[#allocation10 + $0xf4] sm:$0xf]  ;;  %v967_v43 = vld [vmem:[#allocation10 + $0xf8] sm:$0xf0] }
  0x34   :  { %375 = vmatpush.bf16.msra.mxu2 %v734_v9  ;;  %v966_v42 = vor.u32 %v1036_v40, %v965_v39  ;;  %v957_v44 = vld [vmem:[#allocation10 + $0xe0] sm:$0xf]  ;;  %v1034_v45 = vld [vmem:[#allocation10 + $0xe4] sm:$0xf0]  ;;  %v970_v46 = vor.u32 %v1035_v41, %v967_v43  ;;  %v1033_v47 = vld [vmem:[#allocation10 + $0xe4] sm:$0xf] }
  0x35   :  { %388 = vmatpush.bf16.msra.mxu3 %v798_v10  ;;  %v959_v48 = vld [vmem:[#allocation10 + $0xe8] sm:$0xf0]  ;;  %v901_v49 = vld [vmem:[#allocation10 + $0x70] sm:$0xf]  ;;  %v958_v50 = vor.u32 %v1034_v45, %v957_v44  ;;  %v1020_v51 = vld [vmem:[#allocation10 + $0x74] sm:$0xf0] }
  0x36   :  { %v1019_v52 = vld [vmem:[#allocation10 + $0x74] sm:$0xf]  ;;  %v903_v53 = vld [vmem:[#allocation10 + $0x78] sm:$0xf0]  ;;  %v962_v54 = vor.u32 %v1033_v47, %v959_v48  ;;  %v902_v55 = vor.u32 %v1020_v51, %v901_v49  ;;  %v949_v57 = vld [vmem:[#allocation10 + $0xd0] sm:$0xf] }
  0x37   :  { %401 = vmatpush.bf16.msrb.mxu0 %v738_v13  ;;  %414 = vmatpush.bf16.msrb.mxu1 %v802_v14  ;;  %v906_v56 = vor.u32 %v1019_v52, %v903_v53  ;;  %v1032_v58 = vld [vmem:[#allocation10 + $0xd4] sm:$0xf0]  ;;  %v1031_v59 = vld [vmem:[#allocation10 + $0xd4] sm:$0xf]  ;;  %v951_v60 = vld [vmem:[#allocation10 + $0xd8] sm:$0xf0] }
  0x38   :  { %376 = vmatpush.bf16.msra.mxu2 %v726_v18  ;;  %v893_v61 = vld [vmem:[#allocation10 + $0x60] sm:$0xf]  ;;  %v1018_v62 = vld [vmem:[#allocation10 + $0x64] sm:$0xf0]  ;;  %v1017_v0 = vld [vmem:[#allocation10 + $0x64] sm:$0xf]  ;;  %v950_v2 = vor.u32 %v1032_v58, %v949_v57  ;;  %v954_v6 = vor.u32 %v1031_v59, %v951_v60 }
  0x39   :  { %389 = vmatpush.bf16.msra.mxu3 %v790_v22  ;;  %v894_v63 = vor.u32 %v1018_v62, %v893_v61  ;;  %v895_v1 = vld [vmem:[#allocation10 + $0x68] sm:$0xf0]  ;;  %v941_v4 = vld [vmem:[#allocation10 + $0xc0] sm:$0xf]  ;;  %v1030_v5 = vld [vmem:[#allocation10 + $0xc4] sm:$0xf0] }
  0x3a   :  { %v898_v3 = vor.u32 %v1017_v0, %v895_v1  ;;  %v885_v7 = vld [vmem:[#allocation10 + $0x50] sm:$0xf]  ;;  %v1016_v8 = vld [vmem:[#allocation10 + $0x54] sm:$0xf0]  ;;  %v1015_v9 = vld [vmem:[#allocation10 + $0x54] sm:$0xf]  ;;  %v942_v16 = vor.u32 %v1030_v5, %v941_v4 }
  0x3b   :  { %402 = vmatpush.bf16.msrb.mxu0 %v730_v23  ;;  %415 = vmatpush.bf16.msrb.mxu1 %v794_v26  ;;  %v1029_v10 = vld [vmem:[#allocation10 + $0xc4] sm:$0xf]  ;;  %v943_v11 = vld [vmem:[#allocation10 + $0xc8] sm:$0xf0]  ;;  %v887_v12 = vld [vmem:[#allocation10 + $0x58] sm:$0xf0]  ;;  %v886_v13 = vor.u32 %v1016_v8, %v885_v7 }
  0x3c   :  { %377 = vmatpush.bf16.msra.mxu2 %v718_v30  ;;  %v890_v14 = vor.u32 %v1015_v9, %v887_v12  ;;  %v877_v15 = vld [vmem:[#allocation10 + $0x40] sm:$0xf]  ;;  %v1014_v17 = vld [vmem:[#allocation10 + $0x44] sm:$0xf0]  ;;  %v1013_v18 = vld [vmem:[#allocation10 + $0x44] sm:$0xf]  ;;  %v946_v20 = vor.u32 %v1029_v10, %v943_v11 }
  0x3d   :  { %390 = vmatpush.bf16.msra.mxu3 %v782_v34  ;;  %v879_v19 = vld [vmem:[#allocation10 + $0x48] sm:$0xf0]  ;;  %v933_v21 = vld [vmem:[#allocation10 + $0xb0] sm:$0xf]  ;;  %v1028_v22 = vld [vmem:[#allocation10 + $0xb4] sm:$0xf0]  ;;  %v878_v25 = vor.u32 %v1014_v17, %v877_v15 }
  0x3e   :  { %v1027_v23 = vld [vmem:[#allocation10 + $0xb4] sm:$0xf]  ;;  %v935_v24 = vld [vmem:[#allocation10 + $0xb8] sm:$0xf0]  ;;  %v882_v26 = vor.u32 %v1013_v18, %v879_v19  ;;  %v934_v27 = vor.u32 %v1028_v22, %v933_v21  ;;  %v925_v29 = vld [vmem:[#allocation10 + $0xa0] sm:$0xf] }
  0x3f   :  { %403 = vmatpush.bf16.msrb.mxu0 %v722_v35  ;;  %416 = vmatpush.bf16.msrb.mxu1 %v786_v38  ;;  %v938_v28 = vor.u32 %v1027_v23, %v935_v24  ;;  %v1026_v30 = vld [vmem:[#allocation10 + $0xa4] sm:$0xf0]  ;;  %v122_v31 = vld [vmem:[#allocation7] sm:$0x3]  ;;  %v1025_v32 = vld [vmem:[#allocation10 + $0xa4] sm:$0xf] }
  0x40   :  { %624 = vmatpush.bf16.msrb.mxu2 %v902_v55  ;;  %v927_v33 = vld [vmem:[#allocation10 + $0xa8] sm:$0xf0]  ;;  %v926_v34 = vor.u32 %v1026_v30, %v925_v29  ;;  %v124_v35 = vperm.slane %v122_v31, 0  ;;  %v125_v37 = vperm.slane %v122_v31, 1  ;;  %v869_v48 = vld [vmem:[#allocation10 + $0x30] sm:$0xf] }
  0x41   :  { %637 = vmatpush.bf16.msrb.mxu3 %v966_v42  ;;  %v930_v36 = vor.u32 %v1025_v32, %v927_v33  ;;  %v1012_v49 = vld [vmem:[#allocation10 + $0x34] sm:$0xf0]  ;;  %v871_v52 = vld [vmem:[#allocation10 + $0x38] sm:$0xf0]  ;;  %v861_v60 = vld [vmem:[#allocation10 + $0x20] sm:$0xf] }
  0x42   :  { %v870_v51 = vor.u32 %v1012_v49, %v869_v48  ;;  %v1024_v55 = vld [vmem:[#allocation10 + $0x94] sm:$0xf0]  ;;  %v919_v58 = vld [vmem:[#allocation10 + $0x98] sm:$0xf0]  ;;  %v1010_v61 = vld [vmem:[#allocation10 + $0x24] sm:$0xf0] }
  0x43   :  { %663 = vmatpush.bf16.msra.mxu1 %v970_v46  ;;  %650 = vmatpush.bf16.msra.mxu0 %v906_v56  ;;  %v1023_v56 = vld [vmem:[#allocation10 + $0x94] sm:$0xf]  ;;  %v1009_v62 = vld [vmem:[#allocation10 + $0x24] sm:$0xf]  ;;  %v863_v0 = vld [vmem:[#allocation10 + $0x28] sm:$0xf0] }
  0x44   :  { %625 = vmatpush.bf16.msrb.mxu2 %v894_v63  ;;  %v922_v59 = vor.u32 %v1023_v56, %v919_v58  ;;  %v862_v63 = vor.u32 %v1010_v61, %v861_v60  ;;  %v866_v1 = vor.u32 %v1009_v62, %v863_v0  ;;  %v1021_v4 = vld [vmem:[#allocation10 + $0x84] sm:$0xf]  ;;  %v853_v8 = vld [vmem:[#allocation10 + $0x10] sm:$0xf]  ;;  %v1008_v9 = vld [vmem:[#allocation10 + $0x14] sm:$0xf0] }
  0x45   :  { %638 = vmatpush.bf16.msrb.mxu3 %v958_v50  ;;  %v1011_v50 = vld [vmem:[#allocation10 + $0x34] sm:$0xf]  ;;  %v854_v10 = vor.u32 %v1008_v9, %v853_v8  ;;  %v855_v12 = vld [vmem:[#allocation10 + $0x18] sm:$0xf0]  ;;  %v1006_v15 = vld [vmem:[#allocation10 + $0x4] sm:$0xf0] }
  0x46   :  { %v874_v53 = vor.u32 %v1011_v50, %v871_v52  ;;  %v1007_v11 = vld [vmem:[#allocation10 + $0x14] sm:$0xf]  ;;  %v847_v18 = vld [vmem:[#allocation10 + $0x8] sm:$0xf0]  ;;  %v680_v56 = vld [vmem:[#allocation11] sm:$0xff] }
  0x47   :  { %664 = vmatpush.bf16.msra.mxu1 %v962_v54  ;;  %651 = vmatpush.bf16.msra.mxu0 %v898_v3  ;;  %v917_v54 = vld [vmem:[#allocation10 + $0x90] sm:$0xf]  ;;  %v1022_v3 = vld [vmem:[#allocation10 + $0x84] sm:$0xf0] }
  0x48   :  { %626 = vmatpush.bf16.msrb.mxu2 %v886_v13  ;;  %v918_v57 = vor.u32 %v1024_v55, %v917_v54  ;;  %v858_v13 = vor.u32 %v1007_v11, %v855_v12 }
  0x49   :  { %639 = vmatpush.bf16.msrb.mxu3 %v950_v2  ;;  %v909_v2 = vld [vmem:[#allocation10 + $0x80] sm:$0xf] }
  0x4a   :  { %v910_v5 = vor.u32 %v1022_v3, %v909_v2 }
  0x4b   :  { %665 = vmatpush.bf16.msra.mxu1 %v954_v6  ;;  %652 = vmatpush.bf16.msra.mxu0 %v890_v14  ;;  %v911_v6 = vld [vmem:[#allocation10 + $0x88] sm:$0xf0]  ;;  %v845_v14 = vld [vmem:[#allocation10] sm:$0xf] }
  0x4c   :  { %627 = vmatpush.bf16.msrb.mxu2 %v878_v25  ;;  %v914_v7 = vor.u32 %v1021_v4, %v911_v6  ;;  %v846_v17 = vor.u32 %v1006_v15, %v845_v14 }
  0x4d   :  { %640 = vmatpush.bf16.msrb.mxu3 %v942_v16  ;;  %v1005_v16 = vld [vmem:[#allocation10 + $0x4] sm:$0xf] }
  0x4e   :  { %v850_v19 = vor.u32 %v1005_v16, %v847_v18 }
  0x4f   :  { %666 = vmatpush.bf16.msra.mxu1 %v946_v20  ;;  %653 = vmatpush.bf16.msra.mxu0 %v882_v26  ;;  %v204_v20 = vld [vmem:[%s1324_s4] sm:$0x3] }
  0x50   :  { %628 = vmatpush.bf16.msrb.mxu2 %v870_v51  ;;  %v207_v21 = vperm.slane %v204_v20, 1  ;;  %v206_v26 = vperm.slane %v204_v20, 0 }
  0x51   :  { %641 = vmatpush.bf16.msrb.mxu3 %v934_v27 }
  0x53   :  { %667 = vmatpush.bf16.msra.mxu1 %v938_v28  ;;  %654 = vmatpush.bf16.msra.mxu0 %v874_v53 }
  0x54   :  { %629 = vmatpush.bf16.msrb.mxu2 %v862_v63 }
  0x55   :  { %642 = vmatpush.bf16.msrb.mxu3 %v926_v34 }
  0x57   :  { %668 = vmatpush.bf16.msra.mxu1 %v930_v36  ;;  %655 = vmatpush.bf16.msra.mxu0 %v866_v1 }
  0x58   :  { %630 = vmatpush.bf16.msrb.mxu2 %v854_v10 }
  0x59   :  { %643 = vmatpush.bf16.msrb.mxu3 %v918_v57 }
  0x5b   :  { %669 = vmatpush.bf16.msra.mxu1 %v922_v59  ;;  %656 = vmatpush.bf16.msra.mxu0 %v858_v13 }
  0x5c   :  { %631 = vmatpush.bf16.msrb.mxu2 %v846_v17 }
  0x5d   :  { %644 = vmatpush.bf16.msrb.mxu3 %v910_v5 }
  0x5f   :  { %670 = vmatpush.bf16.msra.mxu1 %v914_v7  ;;  %657 = vmatpush.bf16.msra.mxu0 %v850_v19 }
  0x9f   :  { %v151_v38 = vpop.f32.mrf.mxu0  ;;  %v164_v40 = vpop.f32.mrf.mxu1 }
  0xa0   :  { %v152_v39 = vadd.f32 %v151_v38, %v124_v35  ;;  %v165_v41 = vadd.f32 %v164_v40, %v125_v37  ;;  %v458_v40 = vld [vmem:[%s1326_s6] sm:$0x3]  ;;  %s1236_s6 = smov [#allocation13]  }
  0xa1   :  { %v460_v53 = vperm.slane %v458_v40, 0  ;;  %s690_s12 = sshll.u32 %s1236_s6, 4  ;;  %s691_s12 = int_to_ptr.vmem [resolvable:$true] %s690_s12 }
  0xa2   :  { %v168_v42 = vmax.f32 %v152_v39, 0.0  ;;  %v169_v43 = vmax.f32 %v165_v41, 0.0  ;;  %v461_v41 = vperm.slane %v458_v40, 1 }
  0xa4   :  { %v170_v44 = vpack.c.bf16 %v168_v42, %v168_v42  ;;  %v171_v45 = vpack.c.bf16 %v169_v43, %v169_v43 }
  0xa6   :  { %378 = vmatmul.bf16.vlgmr.msra.gmra.mxu2 %v170_v44  ;;  %404 = vmatmul.bf16.vlgmr.msrb.gmra.mxu0 %v170_v44 }
  0xa7   :  { %391 = vmatmul.bf16.vlgmr.msra.gmra.mxu3 %v171_v45  ;;  %417 = vmatmul.bf16.vlgmr.msrb.gmra.mxu1 %v171_v45  ;;  %v153_v46 = vpop.f32.mrf.mxu0  ;;  %v166_v47 = vpop.f32.mrf.mxu1 }
 0x123   :  { %v405_v22 = vpop.f32.mrf.mxu0 }
 0x124   :  { %v406_v23 = vadd.f32 %v405_v22, %v207_v21  ;;  %v418_v24 = vpop.f32.mrf.mxu1 }
 0x126   :  { %v419_v25 = vadd.f32 %v418_v24, %v406_v23 }
 0x128   :  { %v423_v27 = vmax.f32 %v419_v25, 0.0 }
 0x129   :  { %v379_v28 = vpop.f32.mrf.mxu2 }
 0x12a   :  { %v425_v29 = vpack.c.bf16 %v423_v27, %v423_v27  ;;  %v380_v30 = vadd.f32 %v379_v28, %v206_v26  ;;  %v392_v31 = vpop.f32.mrf.mxu3 }
 0x12b   :  { %v407_v32 = vpop.f32.mrf.mxu0 }
 0x12c   :  { %v393_v33 = vadd.f32 %v392_v31, %v380_v30  ;;  %v420_v34 = vpop.f32.mrf.mxu1  ;;  %645 = vmatmul.bf16.vlgmr.msrb.gmra.mxu3 %v425_v29  ;;  %671 = vmatmul.bf16.vlgmr.msra.gmra.mxu1 %v425_v29 }
 0x12e   :  { %v422_v35 = vmax.f32 %v393_v33, 0.0 }
 0x130   :  { %v424_v36 = vpack.c.bf16 %v422_v35, %v422_v35 }
 0x131   :  { %v381_v37 = vpop.f32.mrf.mxu2 }
 0x132   :  { %v394_v38 = vpop.f32.mrf.mxu3  ;;  %632 = vmatmul.bf16.vlgmr.msrb.gmra.mxu2 %v424_v36  ;;  %658 = vmatmul.bf16.vlgmr.msra.gmra.mxu0 %v424_v36 }
 0x1a9   :  { %v672_v39 = vpop.f32.mrf.mxu1 }
 0x1af   :  { %v646_v42 = vpop.f32.mrf.mxu3  ;;  %v659_v43 = vpop.f32.mrf.mxu0 }
 0x1b0   :  { %v660_v44 = vadd.f32 %v659_v43, %v461_v41 }
 0x1b1   :  { %v674_v45 = vpop.f32.mrf.mxu1 }
 0x1b2   :  { %v673_v46 = vadd.f32 %v672_v39, %v660_v44 }
 0x1b4   :  { %v676_v47 = vmax.f32 %v673_v46, -20.0 }
 0x1b5   :  { %v633_v48 = vpop.f32.mrf.mxu2 }
 0x1b6   :  { %v677_v49 = vmin.f32 %v676_v47, 2.0  ;;  %v634_v54 = vadd.f32 %v633_v48, %v460_v53 }
 0x1b7   :  { %v648_v50 = vpop.f32.mrf.mxu3  ;;  %v661_v51 = vpop.f32.mrf.mxu0 }
 0x1b8   :  { %v678_v52 = vmul.f32 1.442695, %v677_v49  ;;  %v647_v58 = vadd.f32 %v646_v42, %v634_v54 }
 0x1ba   :  { %1046 = vpow2.f32 %v678_v52 }
 0x1bd   :  { %v635_v55 = vpop.f32.mrf.mxu2 }
 0x1c0   :  { %v1047_v57 = vpop.eup %1046 }
 0x1c1   :  { %v681_v59 = vmul.f32 %v1047_v57, %v680_v56 }
 0x1c3   :  { %v682_v60 = vadd.f32 %v681_v59, %v647_v58 }
 0x1c5   :  { %1048 = vtanh.f32 %v682_v60 }
 0x1cb   :  { %v1049_v61 = vpop.eup %1048 }
 0x1cc   :  { %684 = vst [vmem:[#allocation13] sm:$0xff] %v1049_v61 }
 0x1cd   :  { %695 = dma.vmem_to_hbm [thread:$0]  %s691_s12, 128, %s693_s15, [#allocation4]  }
 0x1ce   :  { %1226 = dma.done.wait [#allocation4], 128  }
 0x1cf   :  { %1227 = vsyncadd [#allocation4], 4294967168 }
 0x1d0   :  { %700 = vsyncpa [#allocation3], 1 }
 0x1d1   :  { %701 = vsyncpa [#allocation6], 1 }
 0x1d2   :  { %702 = vsyncpa [#allocation9], 1 }
 0x1d3   :  { %703 = vsyncpa [#allocation12], 1 }
 0x1d4   :  { %704 = vsyncpa [#allocation4], 1 }

</bundles_post_ra>
